<compile_context>
chip_gen: v5e
topology: v5e:2x2
jax: 0.10.0
libtpu: 0.0.40
codegen_flags: <defaults>
</compile_context>

<pallas_src>
import functools
import math

import jax
import jax.numpy as jnp
from jax import lax
from jax.experimental import pallas as pl
from jax.experimental.pallas import tpu as pltpu

_LANE = 128
_SUBLANE = 8
_MAX_TILE_ROWS = 2048  # (2048, 128) f32 == 1 MiB per array per pipeline buffer


def _bits_to_uniform(bits_u32):
    """Top 23 bits of a uint32 -> float32 uniform in [0, 1)."""
    b = lax.shift_right_logical(bits_u32, jnp.uint32(9)) | jnp.uint32(0x3F800000)
    return lax.bitcast_convert_type(b, jnp.float32) - jnp.float32(1.0)  # [1,2) - 1


def add_noise_kernel(x_ref, bits_ref, o_ref, *, mean, std):
    bits = bits_ref[...]                                   # (TR, 128) uint32

    # Bernoulli(0.5) mask from bit 0 (independent of the top-23-bit uniform).
    keep = (bits & jnp.uint32(1)) != jnp.uint32(0)

    # Uniform [0,1) from the top 23 bits.
    u = _bits_to_uniform(bits)                             # (TR, 128) f32

    # Box-Muller with pairing across the lane axis:
    #   columns [0,64)  supply u1, columns [64,128) supply u2,
    #   cos/sin of the same (r, theta) give two independent N(0,1) values.
    half = u.shape[1] // 2
    u1 = jnp.maximum(u[:, :half], jnp.float32(1e-9))       # avoid log(0)
    u2 = u[:, half:]
    r = jnp.sqrt(jnp.float32(-2.0) * jnp.log(u1))
    theta = jnp.float32(2.0 * math.pi) * u2
    z = jnp.concatenate([r * jnp.cos(theta), r * jnp.sin(theta)], axis=1)

    noise = jnp.float32(mean) + jnp.float32(std) * z       # (TR, 128) f32

    x = x_ref[...].astype(jnp.float32)
    y = jnp.where(keep, x + noise, x)                      # == x + noise * mask
    o_ref[...] = y.astype(o_ref.dtype)


def add_noise(x, key, mean=0.0, std=1e-5):
    """Pallas implementation of AddNoise.forward."""
    orig_shape = x.shape
    orig_dtype = x.dtype

    flat = x.reshape(-1)
    n = flat.shape[0]

    pad = (-n) % (_LANE * _SUBLANE)
    if pad:
        # Ragged tail: one extra pad/slice pass.  Tensors whose numel is a
        # multiple of 1024 (typical NCHW features) take the copy-free path.
        flat = jnp.pad(flat, (0, pad))
    rows = flat.shape[0] // _LANE
    x2 = flat.reshape(rows, _LANE)

    # One uint32 draw per element (mask + normal are both derived from it).
    bits = jax.random.bits(key, (rows, _LANE), dtype=jnp.uint32)

    tr = min(_MAX_TILE_ROWS, rows)
    grid = (pl.cdiv(rows, tr),)
    kern = functools.partial(add_noise_kernel, mean=float(mean), std=float(std))

    out2 = pl.pallas_call(
        kern,
        out_shape=jax.ShapeDtypeStruct((rows, _LANE), orig_dtype),
        grid=grid,
        in_specs=[
            pl.BlockSpec((tr, _LANE), lambda i: (i, 0)),
            pl.BlockSpec((tr, _LANE), lambda i: (i, 0)),
        ],
        out_specs=pl.BlockSpec((tr, _LANE), lambda i: (i, 0)),
        compiler_params=pltpu.CompilerParams(
            dimension_semantics=("parallel",),
        ),
    )(x2, bits)

    out = out2.reshape(-1)
    if pad:
        out = out[:n]
    return out.reshape(orig_shape)


if __name__ == "__main__":
    key = jax.random.PRNGKey(0)
    kx, kn = jax.random.split(key)

    # NCHW input, small shapes: batch=2, channels=4, spatial=16x16
    x = jax.random.normal(kx, (2, 4, 16, 16), dtype=jnp.float32)

    y = add_noise(x, kn, mean=0.0, std=1e-5)
    y = jax.block_until_ready(y)

    # Sanity: shape/dtype preserved; perturbation is tiny (std = 1e-5);
    # roughly half the elements are untouched (mask == 0).
    assert y.shape == x.shape and y.dtype == x.dtype
    delta = jnp.abs(y - x)
    max_delta = float(jnp.max(delta))
    assert max_delta < 1e-3, f"noise magnitude too large: {max_delta}"
    frac_unchanged = float(jnp.mean((delta == 0).astype(jnp.float32)))
    assert 0.3 < frac_unchanged < 0.7, f"mask ratio off: {frac_unchanged}"

    print("KERNEL_OK")
</pallas_src>

<mosaic_0001>
module attributes {stable_mosaic.version = 11 : i64} {
  func.func @add_noise_kernel(%arg0: i32, %arg1: memref<16x128xf32, #tpu.memory_space<vmem>>, %arg2: memref<16x128xi32, #tpu.memory_space<vmem>>, %arg3: memref<16x128xf32, #tpu.memory_space<vmem>>) attributes {dimension_semantics = [#tpu.dimension_semantics<parallel>], iteration_bounds = array<i64: 1>, scalar_prefetch = 0 : i64, scratch_operands = 0 : i64, tpu.core_type = #tpu.core_type<tc>, window_params = [{transform_indices = @transform_0, window_bounds = array<i64: 16, 128>}, {transform_indices = @transform_1, window_bounds = array<i64: 16, 128>}, {transform_indices = @transform_2, window_bounds = array<i64: 16, 128>}]} {
    %c0 = arith.constant 0 : index
    %c0_0 = arith.constant 0 : index
    %0 = vector.load %arg2[%c0, %c0_0] : memref<16x128xi32, #tpu.memory_space<vmem>>, vector<16x128xi32>
    %c1_i32 = arith.constant 1 : i32
    %1 = vector.broadcast %c1_i32 : i32 to vector<16x128xi32>
    %2 = arith.andi %0, %1 : vector<16x128xi32>
    %c0_i32 = arith.constant 0 : i32
    %3 = vector.broadcast %c0_i32 : i32 to vector<16x128xi32>
    %4 = arith.cmpi ne, %2, %3 : vector<16x128xi32>
    %c9_i32 = arith.constant 9 : i32
    %5 = vector.broadcast %c9_i32 : i32 to vector<16x128xi32>
    %6 = arith.shrui %0, %5 : vector<16x128xi32>
    %c1065353216_i32 = arith.constant 1065353216 : i32
    %7 = vector.broadcast %c1065353216_i32 : i32 to vector<16x128xi32>
    %8 = arith.ori %6, %7 : vector<16x128xi32>
    %9 = tpu.bitcast %8 : vector<16x128xi32> -> vector<16x128xf32>
    %cst = arith.constant 1.000000e+00 : f32
    %10 = vector.broadcast %cst : f32 to vector<16x128xf32>
    %11 = arith.subf %9, %10 : vector<16x128xf32>
    %12 = vector.extract_strided_slice %11 {offsets = [0, 0], sizes = [16, 64], strides = [1, 1]} : vector<16x128xf32> to vector<16x64xf32>
    %cst_1 = arith.constant 9.99999971E-10 : f32
    %13 = vector.broadcast %cst_1 : f32 to vector<16x64xf32>
    %14 = arith.maximumf %12, %13 : vector<16x64xf32>
    %15 = vector.extract_strided_slice %11 {offsets = [0, 64], sizes = [16, 64], strides = [1, 1]} : vector<16x128xf32> to vector<16x64xf32>
    %16 = math.log %14 : vector<16x64xf32>
    %cst_2 = arith.constant -2.000000e+00 : f32
    %17 = vector.broadcast %cst_2 : f32 to vector<16x64xf32>
    %18 = arith.mulf %17, %16 : vector<16x64xf32>
    %19 = math.sqrt %18 : vector<16x64xf32>
    %cst_3 = arith.constant 6.28318548 : f32
    %20 = vector.broadcast %cst_3 : f32 to vector<16x64xf32>
    %21 = arith.mulf %20, %15 : vector<16x64xf32>
    %22 = math.cos %21 : vector<16x64xf32>
    %23 = arith.mulf %19, %22 : vector<16x64xf32>
    %24 = math.sin %21 : vector<16x64xf32>
    %25 = arith.mulf %19, %24 : vector<16x64xf32>
    %26 = tpu.concatenate %23, %25 in 1 : vector<16x64xf32>, vector<16x64xf32> -> vector<16x128xf32>
    %cst_4 = arith.constant 9.99999974E-6 : f32
    %27 = vector.broadcast %cst_4 : f32 to vector<16x128xf32>
    %28 = arith.mulf %27, %26 : vector<16x128xf32>
    %cst_5 = arith.constant 0.000000e+00 : f32
    %29 = vector.broadcast %cst_5 : f32 to vector<16x128xf32>
    %30 = arith.addf %29, %28 : vector<16x128xf32>
    %c0_6 = arith.constant 0 : index
    %c0_7 = arith.constant 0 : index
    %31 = vector.load %arg1[%c0_6, %c0_7] : memref<16x128xf32, #tpu.memory_space<vmem>>, vector<16x128xf32>
    %32 = arith.addf %31, %30 : vector<16x128xf32>
    %33 = arith.select %4, %32, %31 : vector<16x128xi1>, vector<16x128xf32>
    %c0_8 = arith.constant 0 : index
    %c0_9 = arith.constant 0 : index
    %34 = vector.load %arg3[%c0_8, %c0_9] : memref<16x128xf32, #tpu.memory_space<vmem>>, vector<16x128xf32>
    tpu.vector_store %arg3[%c0_8, %c0_9], %33 {strides = array<i32>} : memref<16x128xf32, #tpu.memory_space<vmem>>, vector<16x128xf32>,
    return
  }
  func.func @transform_0(%arg0: i32) -> (i32, i32) {
    %c0_i32 = arith.constant 0 : i32
    %c0_i32_0 = arith.constant 0 : i32
    return %arg0, %c0_i32 : i32, i32
  }
  func.func @transform_1(%arg0: i32) -> (i32, i32) {
    %c0_i32 = arith.constant 0 : i32
    %c0_i32_0 = arith.constant 0 : i32
    return %arg0, %c0_i32 : i32, i32
  }
  func.func @transform_2(%arg0: i32) -> (i32, i32) {
    %c0_i32 = arith.constant 0 : i32
    %c0_i32_0 = arith.constant 0 : i32
    return %arg0, %c0_i32 : i32, i32
  }
}

</mosaic_0001>

<bundles_post_ra>
// kernel: tpu_custom_call.1
= control target key start
LH: loop header
LB: loop body
LE: loop exit
PB: predicated region body
PF: predicated region fallthrough
CT: control target
= control target key end

     0   :  { %7 = vsyncpa [#allocation3], 0  ;;  %s1123_s0 = inlined_call_operand.hbm [shape: f32[16,128], index: 0, kind: input, shape index: {}]   ;;  %s1124_s1 = inlined_call_operand.hbm [shape: u32[16,128], index: 1, kind: input, shape index: {}]   ;;  %s1125_s2 = inlined_call_operand.hbm [shape: f32[16,128], index: 2, kind: output, shape index: {}]  }
   0x1   :  { %8 = vsyncpa [#allocation6], 0 }
   0x2   :  { %9 = vsyncpa [#allocation4], 0  ;;  %s14_s11 = sshll.u32 %s1123_s0, 4  ;;  %s886_s12 = smov [#allocation2]   ;;  %s15_s11 = int_to_ptr.hbm [resolvable:$true] %s14_s11 }
   0x3   :  { %s16_s13 = sshll.u32 %s886_s12, 4  ;;  %s27_s16 = sshll.u32 %s1124_s1, 4  ;;  %s17_s13 = int_to_ptr.vmem [resolvable:$true] %s16_s13  ;;  %s28_s16 = int_to_ptr.hbm [resolvable:$true] %s27_s16 }
   0x4   :  { %s887_s17 = smov 128   ;;  %s888_s18 = smov 8  }
   0x5   :  { %22 = dma.hbm_to_vmem [thread:$0]  %s15_s11, 256, %s17_s13, [#allocation3], %s887_s17, %s887_s17, %s888_s18  }
   0x6   :  { %s889_s19 = smov [#allocation5]  }
   0x7   :  { %s29_s20 = sshll.u32 %s889_s19, 4  ;;  %s30_s20 = int_to_ptr.vmem [resolvable:$true] %s29_s20 }
   0x8   :  { %35 = dma.hbm_to_vmem [thread:$0]  %s28_s16, 256, %s30_s20, [#allocation6], %s887_s17, %s887_s17, %s888_s18  }
   0x9   :  { %880 = dma.done.wait [#allocation3], 256  }
   0xa   :  { %881 = vsyncadd [#allocation3], 4294967040 }
   0xb   :  { %882 = dma.done.wait [#allocation6], 256  }
   0xc   :  { %883 = vsyncadd [#allocation6], 4294967040  ;;  %v926_v0 = vld [vmem:[#allocation5] sm:$0xff]  ;;  %v928_v1 = vld [vmem:[#allocation5 + $0x8] sm:$0xff]  ;;  %v890_v31 = vmov 683565275  }
   0xd   :  { %v50_v2 = vshrl.u32 %v926_v0, 9  ;;  %v51_v3 = vshrl.u32 %v928_v1, 9  ;;  %v891_v33 = vmov 2475754826   ;;  %v892_v35 = vmov 2131351028  }
   0xe   :  { %v893_v37 = vmov 2102212464   ;;  %v894_v39 = vmov 920167782   ;;  %v895_v48 = vmov 1326507024  }
   0xf   :  { %v52_v4 = vor.u32 1065353216, %v50_v2  ;;  %v53_v5 = vor.u32 1065353216, %v51_v3  ;;  %s897_s0 = smov 64   ;;  %s898_s1 = smov [#allocation7]  }
  0x10   :  { %s757_s21 = sshll.u32 %s898_s1, 4  ;;  %s759_s24 = sshll.u32 %s1125_s2, 4  ;;  %s758_s21 = int_to_ptr.vmem [resolvable:$true] %s757_s21  ;;  %s760_s24 = int_to_ptr.hbm [resolvable:$true] %s759_s24 }
  0x11   :  { %v932_v6 = vadd.f32 -1.0, %v52_v4  ;;  %v934_v7 = vadd.f32 -1.0, %v53_v5 }
  0x13   :  { %v937_v8 = vmul.f32 6.2831855, %v932_v6  ;;  %v940_v9 = vmul.f32 6.2831855, %v934_v7 }
  0x15   :  { %v92_v10 = vand.u32 2147483647, %v937_v8  ;;  %v95_v11 = vand.u32 2139095040, %v937_v8  ;;  %v246_v12 = vand.u32 2147483647, %v940_v9  ;;  %v249_v13 = vand.u32 2139095040, %v940_v9 }
  0x17   :  { %v96_v14 = vshrl.u32 %v95_v11, 23  ;;  %v99_v15 = vand.u32 8388607, %v92_v10  ;;  %v250_v16 = vshrl.u32 %v249_v13, 23  ;;  %v253_v20 = vand.u32 8388607, %v246_v12 }
  0x19   :  { %v775_v17 = vadd.s32 4294967169, %v96_v14  ;;  %v100_v18 = vor.u32 8388608, %v99_v15  ;;  %v778_v19 = vadd.s32 4294967169, %v250_v16  ;;  %v254_v25 = vor.u32 8388608, %v253_v20 }
  0x1b   :  { %v102_v21 = vadd.s32 1, %v775_v17  ;;  %v256_v22 = vadd.s32 1, %v778_v19  ;;  %v950_v24 = vshll.u32 %v100_v18, 8  ;;  %v960_v42 = vshll.u32 %v254_v25, 8 }
  0x1d   :  { %vm103_vm0 = vcmp.gt.s32.totalorder %v102_v21, 0  ;;  %vm257_vm1 = vcmp.gt.s32.totalorder %v256_v22, 0  ;;  %v141_v41 = vand.u32 65535, %v950_v24  ;;  %v142_v46 = vshrl.u32 %v950_v24, 16 }
  0x1e   :  { %v104_v23 = vsel %vm103_vm0, %v102_v21, 0  ;;  %v258_v27 = vsel %vm257_vm1, %v256_v22, 0 }
  0x1f   :  { %v106_v26 = vand.u32 31, %v104_v23  ;;  %v952_v28 = vshrl.u32 %v104_v23, 5  ;;  %v954_v29 = vand.u32 31, %v258_v27  ;;  %v978_v59 = vshrl.u32 %v258_v27, 5 }
  0x21   :  { %v107_v30 = vsub.s32 32, %v106_v26  ;;  %v109_v32 = vshll.u32 %v890_v31, %v106_v26  ;;  %v112_v34 = vshll.u32 %v891_v33, %v106_v26  ;;  %v115_v36 = vshll.u32 %v892_v35, %v106_v26 }
  0x22   :  { %v118_v38 = vshll.u32 %v893_v37, %v106_v26  ;;  %v121_v40 = vshll.u32 %v894_v39, %v106_v26  ;;  %vm124_vm2 = vcmp.lt.s32.totalorder %v952_v28, 1  ;;  %vm127_vm3 = vcmp.lt.s32.totalorder %v952_v28, 4 }
  0x23   :  { %v110_v43 = vshrl.u32 %v891_v33, %v107_v30  ;;  %v113_v44 = vshrl.u32 %v892_v35, %v107_v30  ;;  %v116_v45 = vshrl.u32 %v893_v37, %v107_v30  ;;  %v119_v47 = vshrl.u32 %v894_v39, %v107_v30 }
  0x24   :  { %v122_v49 = vshrl.u32 %v895_v48, %v107_v30  ;;  %v969_v53 = vsub.s32 32, %v954_v29  ;;  %v108_v54 = vshrl.u32 %v890_v31, %v107_v30  ;;  %vm126_vm4 = vcmp.lt.s32.totalorder %v952_v28, 3 }
  0x25   :  { %v111_v50 = vor.u32 %v110_v43, %v109_v32  ;;  %v114_v51 = vor.u32 %v113_v44, %v112_v34  ;;  %v117_v52 = vor.u32 %v116_v45, %v115_v36  ;;  %v120_v55 = vor.u32 %v119_v47, %v118_v38 }
  0x26   :  { %v123_v56 = vor.u32 %v122_v49, %v121_v40  ;;  %vm125_vm5 = vcmp.lt.s32.totalorder %v952_v28, 2  ;;  %v263_v62 = vshll.u32 %v890_v31, %v954_v29  ;;  %v266_v63 = vshll.u32 %v891_v33, %v954_v29 }
  0x27   :  { %v132_v57 = vsel %vm124_vm2, %v111_v50, %v114_v51  ;;  %v136_v58 = vsel %vm124_vm2, %v114_v51, %v117_v52  ;;  %v133_v60 = vsel %vm127_vm3, %v120_v55, 920167782  ;;  %v129_v2 = vsel %vm127_vm3, %v117_v52, 2102212464 }
  0x28   :  { %v137_v61 = vsel %vm127_vm3, %v123_v56, 1326507024  ;;  %v134_v3 = vsel %vm126_vm4, %v117_v52, %v133_v60  ;;  %v264_v5 = vshrl.u32 %v891_v33, %v969_v53  ;;  %v128_v11 = vsel %vm124_vm2, %v108_v54, %v111_v50 }
  0x29   :  { %v138_v4 = vsel %vm126_vm4, %v120_v55, %v137_v61  ;;  %v135_v13 = vsel %vm125_vm5, %v132_v57, %v134_v3  ;;  %v267_v15 = vshrl.u32 %v892_v35, %v969_v53  ;;  %v130_v20 = vsel %vm126_vm4, %v114_v51, %v129_v2 }
  0x2a   :  { %v139_v14 = vsel %vm125_vm5, %v136_v58, %v138_v4  ;;  %v165_v18 = vand.u32 65535, %v135_v13  ;;  %v166_v19 = vshrl.u32 %v135_v13, 16  ;;  %v1003_v21 = vor.u32 %v264_v5, %v263_v62 }
  0x2b   :  { %v143_v16 = vand.u32 65535, %v139_v14  ;;  %v144_v17 = vshrl.u32 %v139_v14, 16  ;;  %v1005_v22 = vor.u32 %v267_v15, %v266_v63  ;;  %v269_v23 = vshll.u32 %v892_v35, %v954_v29 }
  0x2c   :  { %v270_v30 = vshrl.u32 %v893_v37, %v969_v53  ;;  %v167_v33 = vmul.u32 %v165_v18, %v141_v41  ;;  %v168_v34 = vmul.u32 %v166_v19, %v141_v41  ;;  %v169_v36 = vmul.u32 %v165_v18, %v142_v46 }
  0x2d   :  { %v145_v25 = vmul.u32 %v143_v16, %v141_v41  ;;  %v146_v26 = vmul.u32 %v144_v17, %v141_v41  ;;  %v147_v27 = vmul.u32 %v143_v16, %v142_v46  ;;  %v148_v32 = vmul.u32 %v144_v17, %v142_v46 }
  0x2e   :  { %v170_v44 = vmul.u32 %v166_v19, %v142_v46  ;;  %v171_v47 = vshll.u32 %v168_v34, 16  ;;  %v172_v49 = vshrl.u32 %v168_v34, 16  ;;  %v173_v50 = vshll.u32 %v169_v36, 16 }
  0x2f   :  { %v149_v38 = vshll.u32 %v146_v26, 16  ;;  %v150_v40 = vshrl.u32 %v146_v26, 16  ;;  %v151_v43 = vshll.u32 %v147_v27, 16  ;;  %v152_v45 = vshrl.u32 %v147_v27, 16 }
  0x30   :  { %v174_v51 = vshrl.u32 %v169_v36, 16  ;;  %v272_v52 = vshll.u32 %v893_v37, %v954_v29  ;;  %v896_v54 = vmov 0   ;;  %vm175_vm7 = vc.u32 %v167_v33, %v171_v47 }
  0x31   :  { %vm153_vm6 = vc.u32 %v145_v25, %v149_v38  ;;  %v155_v35 = vadd.s32 %v149_v38, %v145_v25  ;;  %v177_v41 = vadd.s32 %v171_v47, %v167_v33  ;;  %v273_v56 = vshrl.u32 %v894_v39, %v969_v53 }
  0x32   :  { %v154_v55 = vsel %vm153_vm6, 1, %v896_v54  ;;  %v176_v46 = vsel %vm175_vm7, 1, %v896_v54  ;;  %v275_v58 = vshll.u32 %v894_v39, %v954_v29  ;;  %v271_v37 = vor.u32 %v270_v30, %v269_v23 }
  0x33   :  { %v156_v57 = vadd.s32 %v154_v55, %v148_v32  ;;  %vm157_vm8 = vc.u32 %v155_v35, %v151_v43  ;;  %v178_v61 = vadd.s32 %v176_v46, %v170_v44  ;;  %vm179_vm9 = vc.u32 %v177_v41, %v173_v50 }
  0x34   :  { %v158_v60 = vsel %vm157_vm8, 1, %v896_v54  ;;  %v180_v63 = vsel %vm179_vm9, 1, %v896_v54  ;;  %v274_v2 = vor.u32 %v273_v56, %v272_v52  ;;  %v276_v3 = vshrl.u32 %v895_v48, %v969_v53 }
  0x35   :  { %v160_v62 = vadd.s32 %v158_v60, %v156_v57  ;;  %v1022_v4 = vadd.s32 %v177_v41, %v173_v50  ;;  %v182_v5 = vadd.s32 %v180_v63, %v178_v61  ;;  %vm278_vm10 = vcmp.lt.s32.totalorder %v978_v59, 1 }
  0x36   :  { %vm280_vm11 = vcmp.lt.s32.totalorder %v978_v59, 3  ;;  %v277_v39 = vor.u32 %v276_v3, %v275_v58  ;;  %vm279_vm12 = vcmp.lt.s32.totalorder %v978_v59, 2  ;;  %vm281_vm13 = vcmp.lt.s32.totalorder %v978_v59, 4 }
  0x37   :  { %v161_v29 = vadd.s32 %v160_v62, %v150_v40  ;;  %v131_v13 = vsel %vm125_vm5, %v128_v11, %v130_v20  ;;  %v183_v14 = vadd.s32 %v182_v5, %v172_v49  ;;  %v286_v48 = vsel %vm278_vm10, %v1003_v21, %v1005_v22 }
  0x38   :  { %v287_v15 = vsel %vm281_vm13, %v274_v2, 920167782  ;;  %v290_v18 = vsel %vm278_vm10, %v1005_v22, %v271_v37  ;;  %v296_v28 = vshrl.u32 %v960_v42, 16  ;;  %v291_v20 = vsel %vm281_vm13, %v277_v39, 1326507024 }
  0x39   :  { %v1036_v16 = vadd.s32 %v161_v29, %v152_v45  ;;  %v288_v17 = vsel %vm280_vm11, %v271_v37, %v287_v15  ;;  %v184_v11 = vadd.s32 %v183_v14, %v174_v51  ;;  %v295_v23 = vand.u32 65535, %v960_v42 }
  0x3a   :  { %v289_v19 = vsel %vm279_vm12, %v286_v48, %v288_v17  ;;  %v185_v25 = vmul.u32 %v950_v24, %v131_v13  ;;  %v292_v26 = vsel %vm280_vm11, %v274_v2, %v291_v20  ;;  %v262_v57 = vshrl.u32 %v890_v31, %v969_v53 }
  0x3b   :  { %vm187_vm14 = vc.u32 %v1036_v16, %v1022_v4  ;;  %v319_v27 = vand.u32 65535, %v289_v19  ;;  %v188_v30 = vadd.s32 1, %v184_v11  ;;  %v293_v32 = vsel %vm279_vm12, %v290_v18, %v292_v26 }
  0x3c   :  { %v320_v33 = vshrl.u32 %v289_v19, 16  ;;  %v297_v34 = vand.u32 65535, %v293_v32  ;;  %v298_v36 = vshrl.u32 %v293_v32, 16  ;;  %v283_v62 = vsel %vm281_vm13, %v271_v37, 2102212464 }
  0x3d   :  { %v323_v38 = vmul.u32 %v319_v27, %v296_v28  ;;  %v189_v40 = vsel %vm187_vm14, %v188_v30, %v184_v11  ;;  %v321_v43 = vmul.u32 %v319_v27, %v295_v23  ;;  %v282_v31 = vsel %vm278_vm10, %v262_v57, %v1003_v21 }
  0x3e   :  { %v322_v44 = vmul.u32 %v320_v33, %v295_v23  ;;  %v190_v45 = vadd.s32 %v189_v40, %v185_v25  ;;  %v299_v24 = vmul.u32 %v297_v34, %v295_v23  ;;  %v300_v47 = vmul.u32 %v298_v36, %v295_v23 }
  0x3f   :  { %v301_v49 = vmul.u32 %v297_v34, %v296_v28  ;;  %v324_v50 = vmul.u32 %v320_v33, %v296_v28  ;;  %v327_v51 = vshll.u32 %v323_v38, 16  ;;  %v302_v55 = vmul.u32 %v298_v36, %v296_v28 }
  0x40   :  { %v325_v35 = vshll.u32 %v322_v44, 16  ;;  %v191_v52 = vadd.s32 536870912, %v190_v45  ;;  %v303_v41 = vshll.u32 %v300_v47, 16  ;;  %v304_v5 = vshrl.u32 %v300_v47, 16 }
  0x41   :  { %v305_v56 = vshll.u32 %v301_v49, 16  ;;  %v326_v39 = vshrl.u32 %v322_v44, 16  ;;  %v284_v37 = vsel %vm280_vm11, %v1005_v22, %v283_v62  ;;  %v306_v48 = vshrl.u32 %v301_v49, 16 }
  0x42   :  { %vm329_vm15 = vc.u32 %v321_v43, %v325_v35  ;;  %v331_v46 = vadd.s32 %v325_v35, %v321_v43  ;;  %v1058_v58 = vshrl.u32 %v191_v52, 30  ;;  %vm307_vm0 = vc.u32 %v299_v24, %v303_v41 }
  0x43   :  { %v309_v60 = vadd.s32 %v303_v41, %v299_v24  ;;  %v330_v61 = vsel %vm329_vm15, 1, %v896_v54  ;;  %v308_v63 = vsel %vm307_vm0, 1, %v896_v54  ;;  %v328_v17 = vshrl.u32 %v323_v38, 16 }
  0x44   :  { %v332_v2 = vadd.s32 %v330_v61, %v324_v50  ;;  %vm333_vm1 = vc.u32 %v331_v46, %v327_v51  ;;  %v193_v3 = vshll.u32 %v1058_v58, 30  ;;  %v310_v29 = vadd.s32 %v308_v63, %v302_v55 }
  0x45   :  { %vm311_vm2 = vc.u32 %v309_v60, %v305_v56  ;;  %v334_v13 = vsel %vm333_vm1, 1, %v896_v54  ;;  %v335_v19 = vadd.s32 %v331_v46, %v327_v51  ;;  %v285_v21 = vsel %vm279_vm12, %v282_v31, %v284_v37 }
  0x46   :  { %v312_v53 = vsel %vm311_vm2, 1, %v896_v54  ;;  %v194_v14 = vsub.s32 %v190_v45, %v193_v3  ;;  %v336_v18 = vadd.s32 %v334_v13, %v332_v2  ;;  %v339_v27 = vmul.u32 %v960_v42, %v285_v21 }
  0x47   :  { %v314_v15 = vadd.s32 %v312_v53, %v310_v29  ;;  %v186_v32 = vadd.s32 %v1022_v4, %v1036_v16  ;;  %v216_v55 = vsub.s32 4, %v1058_v58  ;;  %vm94_vm7 = vcmp.lt.s32.totalorder %v937_v8, 0 }
  0x48   :  { %vm195_vm3 = vcmp.lt.s32.totalorder %v194_v14, 0  ;;  %v196_v28 = vsub.s32 0, %v194_v14  ;;  %v337_v20 = vadd.s32 %v336_v18, %v326_v39  ;;  %vm93_vm8 = vcmp.le.f32.partialorder %v92_v10, 0.7853982 }
  0x49   :  { %v315_v11 = vadd.s32 %v314_v15, %v304_v5  ;;  %v217_v60 = vsel %vm94_vm7, %v216_v55, %v1058_v58  ;;  %vm248_vm11 = vcmp.lt.s32.totalorder %v940_v9, 0  ;;  %vm1090_vm13 = vcmp.le.f32.partialorder %v246_v12, 0.7853982 }
  0x4a   :  { %v197_v23 = vsel %vm195_vm3, %v196_v28, %v194_v14  ;;  %v338_v26 = vadd.s32 %v337_v20, %v328_v17  ;;  %v219_v3 = vsel %vm93_vm8, 0, %v217_v60  ;;  %vm235_vm2 = vweird.f32 %v937_v8 }
  0x4b   :  { %v316_v25 = vadd.s32 %v315_v11, %v306_v48  ;;  %v198_v54 = vclz %v197_v23  ;;  %v554_v48 = vadd.s32 3, %v219_v3 }
  0x4c   :  { %v342_v30 = vadd.s32 1, %v338_v26 }
  0x4d   :  { %vm341_vm4 = vc.u32 %v316_v25, %v335_v19  ;;  %v776_v22 = vadd.s32 4294967294, %v198_v54  ;;  %v340_v2 = vadd.s32 %v335_v19, %v316_v25  ;;  %v555_v19 = vand.u32 3, %v554_v48 }
  0x4e   :  { %v343_v33 = vsel %vm341_vm4, %v342_v30, %v338_v26  ;;  %v236_v25 = vand.u32 3, %v219_v3 }
  0x4f   :  { %vm777_vm5 = vcmp.lt.s32.totalorder %v776_v22, 0  ;;  %v344_v36 = vadd.s32 %v343_v33, %v339_v27  ;;  %vm560_vm10 = vcmp.eq.s32.totalorder %v555_v19, 2  ;;  %vm556_vm14 = vcmp.lt.s32.totalorder %v555_v19, 2 }
  0x50   :  { %v201_v34 = vsel %vm777_vm5, 0, %v776_v22  ;;  %vm241_vm12 = vcmp.eq.s32.totalorder %v236_v25, 2  ;;  %vm557_vm15 = vcmp.eq.s32.totalorder %v555_v19, 0  ;;  %vm238_vm0 = vcmp.eq.s32.totalorder %v236_v25, 0 }
  0x51   :  { %v202_v38 = vsub.s32 32, %v201_v34  ;;  %v203_v59 = vshll.u32 %v194_v14, %v201_v34  ;;  %v206_v40 = vsub.s32 4294967266, %v201_v34  ;;  %v345_v43 = vadd.s32 536870912, %v344_v36 }
  0x52   :  { %vm237_vm1 = vcmp.lt.s32.totalorder %v236_v25, 2  ;;  %v59_v19 = vmax.f32 %v934_v7, 1e-09 }
  0x53   :  { %v204_v44 = vshrl.u32 %v186_v32, %v202_v38  ;;  %v207_v45 = vadd.s32 127, %v206_v40  ;;  %v1078_v24 = vshrl.u32 %v345_v43, 30 }
  0x55   :  { %v205_v47 = vor.u32 %v204_v44, %v203_v59  ;;  %v208_v42 = vshll.u32 %v207_v45, 23  ;;  %v347_v49 = vshll.u32 %v1078_v24, 30  ;;  %v370_v38 = vsub.s32 4, %v1078_v24 }
  0x57   :  { %v209_v50 = vor.u32 4788187, %v208_v42  ;;  %v212_v35 = vcvt.s32.f32 %v205_v47  ;;  %v348_v51 = vsub.s32 %v344_v36, %v347_v49  ;;  %v371_v12 = vsel %vm248_vm11, %v370_v38, %v1078_v24 }
  0x59   :  { %v210_v4 = vand.u32 2147483647, %v209_v50  ;;  %vm349_vm6 = vcmp.lt.s32.totalorder %v348_v51, 0  ;;  %v350_v16 = vsub.s32 0, %v348_v51 }
  0x5b   :  { %v213_v52 = vmul.f32 %v212_v35, %v210_v4  ;;  %v351_v41 = vsel %vm349_vm6, %v350_v16, %v348_v51 }
  0x5c   :  { %v352_v57 = vclz %v351_v41 }
  0x5d   :  { %v214_v56 = vxor.u32 2147483648, %v213_v52 }
  0x5e   :  { %v779_v61 = vadd.s32 4294967294, %v352_v57 }
  0x5f   :  { %v215_v46 = vsel %vm94_vm7, %v214_v56, %v213_v52 }
  0x60   :  { %v218_v62 = vsel %vm93_vm8, %v937_v8, %v215_v46  ;;  %vm780_vm9 = vcmp.lt.s32.totalorder %v779_v61, 0  ;;  %v373_v8 = vsel %vm1090_vm13, 0, %v371_v12 }
  0x61   :  { %v220_v63 = vmul.f32 %v218_v62, %v218_v62  ;;  %v355_v5 = vsel %vm780_vm9, 0, %v779_v61  ;;  %v709_v56 = vadd.s32 3, %v373_v8  ;;  %vm389_vm9 = vweird.f32 %v940_v9 }
  0x62   :  { %v356_v53 = vsub.s32 32, %v355_v5  ;;  %v357_v39 = vshll.u32 %v348_v51, %v355_v5  ;;  %v360_v13 = vsub.s32 4294967266, %v355_v5 }
  0x63   :  { %v221_v29 = vmul.f32 -0.001358992, %v220_v63  ;;  %v228_v31 = vmul.f32 -0.00019511016, %v220_v63 }
  0x64   :  { %v358_v37 = vshrl.u32 %v340_v2, %v356_v53  ;;  %v361_v15 = vadd.s32 127, %v360_v13 }
  0x65   :  { %v222_v14 = vadd.f32 0.041655596, %v221_v29  ;;  %v229_v10 = vadd.f32 0.008332121, %v228_v31 }
  0x66   :  { %v359_v18 = vor.u32 %v358_v37, %v357_v39  ;;  %v362_v28 = vshll.u32 %v361_v15, 23 }
  0x67   :  { %v223_v17 = vmul.f32 %v222_v14, %v220_v63  ;;  %v230_v58 = vmul.f32 %v229_v10, %v220_v63 }
  0x68   :  { %v363_v20 = vor.u32 4788187, %v362_v28  ;;  %v366_v23 = vcvt.s32.f32 %v359_v18  ;;  %v58_v18 = vmax.f32 %v932_v6, 1e-09 }
  0x69   :  { %v224_v11 = vadd.f32 -0.4999988, %v223_v17  ;;  %v231_v21 = vadd.f32 -0.16666654, %v230_v58 }
  0x6a   :  { %v364_v27 = vand.u32 2147483647, %v363_v20  ;;  %800 = vlog2.f32 %v58_v18 }
  0x6b   :  { %v225_v54 = vmul.f32 %v224_v11, %v220_v63  ;;  %v232_v26 = vmul.f32 %v231_v21, %v220_v63  ;;  %v390_v63 = vand.u32 3, %v373_v8 }
  0x6c   :  { %v367_v32 = vmul.f32 %v366_v23, %v364_v27 }
  0x6d   :  { %v226_v22 = vadd.f32 1.0, %v225_v54  ;;  %v233_v30 = vadd.f32 1.0, %v232_v26  ;;  %vm395_vm4 = vcmp.eq.s32.totalorder %v390_v63, 2  ;;  %vm392_vm7 = vcmp.eq.s32.totalorder %v390_v63, 0 }
  0x6e   :  { %v368_v59 = vxor.u32 2147483648, %v367_v32  ;;  %vm391_vm8 = vcmp.lt.s32.totalorder %v390_v63, 2 }
  0x6f   :  { %v234_v33 = vmul.f32 %v233_v30, %v218_v62  ;;  %v242_v34 = vxor.u32 2147483648, %v226_v22  ;;  %v710_v62 = vand.u32 3, %v709_v56 }
  0x70   :  { %v369_v45 = vsel %vm248_vm11, %v368_v59, %v367_v32  ;;  %v801_v28 = vpop.eup %800 }
  0x71   :  { %v239_v40 = vxor.u32 2147483648, %v234_v33  ;;  %v562_v43 = vsel %vm560_vm10, %v242_v34, %v234_v33  ;;  %v243_v44 = vsel %vm241_vm12, %v242_v34, %v234_v33  ;;  %v372_v42 = vsel %vm1090_vm13, %v940_v9, %v369_v45 }
  0x72   :  { %v374_v35 = vmul.f32 %v372_v42, %v372_v42  ;;  %vm715_vm3 = vcmp.eq.s32.totalorder %v710_v62, 2  ;;  %vm711_vm5 = vcmp.lt.s32.totalorder %v710_v62, 2  ;;  %vm712_vm6 = vcmp.eq.s32.totalorder %v710_v62, 0  ;;  %v746_v62 = vld [vmem:[#allocation2 + $0x8] sm:$0xff] }
  0x73   :  { %v559_v47 = vsel %vm557_vm15, %v226_v22, %v239_v40  ;;  %v240_v49 = vsel %vm238_vm0, %v226_v22, %v239_v40  ;;  %v61_v11 = vmul.f32 0.6931472, %v801_v28 }
  0x74   :  { %v563_v50 = vsel %vm556_vm14, %v559_v47, %v562_v43  ;;  %v244_v51 = vsel %vm237_vm1, %v240_v49, %v243_v44  ;;  %v375_v52 = vmul.f32 -0.001358992, %v374_v35  ;;  %v382_v55 = vmul.f32 -0.00019511016, %v374_v35 }
  0x75   :  { %v564_v4 = vsel %vm235_vm2, nan, %v563_v50  ;;  %v245_v16 = vsel %vm235_vm2, nan, %v244_v51  ;;  %v64_v21 = vmul.f32 -2.0, %v61_v11  ;;  %vm738_vm14 = vcmask 523264  }
  0x76   :  { %722 = vrot.lane.b32.xlu0 %v564_v4, %s897_s0  ;;  %402 = vrot.lane.b32.xlu1 %v245_v16, %s897_s0  ;;  %v376_v24 = vadd.f32 0.041655596, %v375_v52  ;;  %v383_v41 = vadd.f32 0.008332121, %v382_v55  ;;  %v46_v16 = vand.u32 1, %v926_v0  ;;  %v745_v52 = vld [vmem:[#allocation2] sm:$0xff] }
  0x77   :  { %802 = vrsqrt.f32 %v64_v21  ;;  %vm73_vm10 = vcmp.eq.f32.partialorder %v64_v21, inf  ;;  %v76_v34 = vand.u32 2147483648, %v64_v21  ;;  %vm75_vm11 = vcmp.eq.f32.partialorder %v64_v21, 0.0 }
  0x78   :  { %v377_v57 = vmul.f32 %v376_v24, %v374_v35  ;;  %v384_v46 = vmul.f32 %v383_v41, %v374_v35  ;;  %804 = vlog2.f32 %v59_v19  ;;  %vm48_vm15 = vcmp.ne.s32.totalorder %v46_v16, 0 }
  0x7a   :  { %v378_v60 = vadd.f32 -0.4999988, %v377_v57  ;;  %v385_v61 = vadd.f32 -0.16666654, %v384_v46 }
  0x7c   :  { %v379_v2 = vmul.f32 %v378_v60, %v374_v35  ;;  %v386_v3 = vmul.f32 %v385_v61, %v374_v35  ;;  %v47_v60 = vand.u32 1, %v928_v1 }
  0x7d   :  { %v803_v9 = vpop.eup %802 }
  0x7e   :  { %v380_v5 = vadd.f32 1.0, %v379_v2  ;;  %v387_v29 = vadd.f32 1.0, %v386_v3  ;;  %v805_v20 = vpop.eup %804  ;;  %v67_v23 = vmul.f32 %v803_v9, %v64_v21  ;;  %vm49_vm0 = vcmp.ne.s32.totalorder %v47_v60, 0 }
  0x7f   :  { %v63_v25 = vmul.f32 0.6931472, %v805_v20 }
  0x80   :  { %v388_v31 = vmul.f32 %v387_v29, %v372_v42  ;;  %v396_v53 = vxor.u32 2147483648, %v380_v5  ;;  %v68_v54 = vmul.f32 %v803_v9, %v67_v23 }
  0x81   :  { %v65_v26 = vmul.f32 -2.0, %v63_v25 }
  0x82   :  { %v393_v39 = vxor.u32 2147483648, %v388_v31  ;;  %v717_v13 = vsel %vm715_vm3, %v396_v53, %v388_v31  ;;  %v397_v14 = vsel %vm395_vm4, %v396_v53, %v388_v31  ;;  %v69_v27 = vmul.f32 0.5, %v68_v54 }
  0x83   :  { %806 = vrsqrt.f32 %v65_v26  ;;  %vm85_vm12 = vcmp.eq.f32.partialorder %v65_v26, inf  ;;  %v88_v12 = vand.u32 2147483648, %v65_v26  ;;  %vm87_vm13 = vcmp.eq.f32.partialorder %v65_v26, 0.0 }
  0x84   :  { %v714_v10 = vsel %vm712_vm6, %v380_v5, %v393_v39  ;;  %v394_v37 = vsel %vm392_vm7, %v380_v5, %v393_v39  ;;  %v70_v22 = vsub.f32 1.5, %v69_v27 }
  0x85   :  { %v718_v48 = vsel %vm711_vm5, %v714_v10, %v717_v13  ;;  %v398_v15 = vsel %vm391_vm8, %v394_v37, %v397_v14 }
  0x86   :  { %v719_v17 = vsel %vm389_vm9, nan, %v718_v48  ;;  %v399_v58 = vsel %vm389_vm9, nan, %v398_v15  ;;  %v71_v32 = vmul.f32 %v803_v9, %v70_v22 }
  0x87   :  { %724 = vrot.lane.b32.xlu0 %v719_v17, %s897_s0  ;;  %404 = vrot.lane.b32.xlu1 %v399_v58, %s897_s0 }
  0x88   :  { %v72_v33 = vmul.f32 %v71_v32, %v64_v21 }
  0x89   :  { %v807_v30 = vpop.eup %806 }
  0x8a   :  { %v79_v6 = vmul.f32 %v807_v30, %v65_v26  ;;  %v74_v38 = vsel %vm73_vm10, %v64_v21, %v72_v33 }
  0x8b   :  { %v77_v7 = vsel %vm75_vm11, %v76_v34, %v74_v38 }
  0x8c   :  { %v80_v36 = vmul.f32 %v807_v30, %v79_v6 }
  0x8e   :  { %v81_v59 = vmul.f32 0.5, %v80_v36 }
  0x90   :  { %v82_v44 = vsub.f32 1.5, %v81_v59 }
  0x92   :  { %v83_v45 = vmul.f32 %v807_v30, %v82_v44 }
  0x94   :  { %v84_v47 = vmul.f32 %v83_v45, %v65_v26 }
  0x96   :  { %v86_v42 = vsel %vm85_vm12, %v65_v26, %v84_v47 }
  0x97   :  { %v89_v49 = vsel %vm87_vm13, %v88_v12, %v86_v42 }
  0xe8   :  { %v723_v40 = vpop.permute.xlu0 %722  ;;  %v403_v51 = vpop.permute.xlu1 %402 }
  0xe9   :  { %v728_v43 = vmul.f32 %v723_v40, %v77_v7  ;;  %v408_v4 = vmul.f32 %v403_v51, %v77_v7 }
  0xeb   :  { %732 = vrot.lane.b32.xlu2 %v728_v43, %s897_s0 }
  0xf9   :  { %v725_v50 = vpop.permute.xlu0 %724  ;;  %v405_v57 = vpop.permute.xlu1 %404 }
  0xfa   :  { %v729_v35 = vmul.f32 %v725_v50, %v89_v49  ;;  %v409_v46 = vmul.f32 %v405_v57, %v89_v49 }
  0xfc   :  { %734 = vrot.lane.b32.xlu2 %v729_v35, %s897_s0 }
 0x145   :  { %v733_v8 = vpop.permute.xlu2 %732 }
 0x146   :  { %v739_v55 = vsel %vm738_vm14, %v408_v4, %v733_v8 }
 0x147   :  { %v741_v24 = vmul.f32 1e-05, %v739_v55 }
 0x149   :  { %v747_v41 = vadd.f32 %v745_v52, %v741_v24 }
 0x14b   :  { %v749_v56 = vsel %vm48_vm15, %v747_v41, %v745_v52 }
 0x14c   :  { %751 = vst [vmem:[#allocation7] sm:$0xff] %v749_v56 }
 0x156   :  { %v735_v61 = vpop.permute.xlu2 %734 }
 0x157   :  { %v740_v63 = vsel %vm738_vm14, %v409_v46, %v735_v61 }
 0x158   :  { %v742_v2 = vmul.f32 1e-05, %v740_v63 }
 0x15a   :  { %v748_v0 = vadd.f32 %v746_v62, %v742_v2 }
 0x15c   :  { %v750_v3 = vsel %vm49_vm0, %v748_v0, %v746_v62 }
 0x15d   :  { %752 = vst [vmem:[#allocation7 + $0x8] sm:$0xff] %v750_v3 }
 0x15e   :  { %765 = dma.vmem_to_hbm [thread:$0]  %s758_s21, 256, %s760_s24, [#allocation4], %s887_s17, %s887_s17, %s888_s18  }
 0x15f   :  { %884 = dma.done.wait [#allocation4], 256  }
 0x160   :  { %885 = vsyncadd [#allocation4], 4294967040 }
 0x161   :  { %770 = vsyncpa [#allocation3], 1 }
 0x162   :  { %771 = vsyncpa [#allocation6], 1 }
 0x163   :  { %772 = vsyncpa [#allocation4], 1 }

</bundles_post_ra>
